<compile_context>
chip_gen: v5e
topology: v5e:2x2
jax: 0.10.0
libtpu: 0.0.40
codegen_flags: <defaults>
</compile_context>

<pallas_src>
import jax
import jax.numpy as jnp
from jax.experimental import pallas as pl
from jax.experimental.pallas import tpu as pltpu


def _kv_matmul_kernel(p_ref, w_ref, b_ref, o_ref):
    # p_ref: (blk_m, 9*Cin)  bf16 im2col patches for this row block
    # w_ref: (9*Cin, Npad)   bf16 fused Key|Value weights (Cout zero-padded)
    # b_ref: (1, Npad)       f32 fused bias (zero-padded)
    # o_ref: (blk_m, Npad)   f32 lane-dense output slab
    acc = jnp.dot(p_ref[...], w_ref[...], preferred_element_type=jnp.float32)
    o_ref[...] = (acc + b_ref[...]).astype(o_ref.dtype)


def key_value_forward(x_nchw, wk, bk, wv, bv, *, blk_m=256):
    """Pallas equivalent of KeyValue.forward.

    Args:
      x_nchw: (B, Cin, H, W) input, NCHW like the PyTorch module.
      wk, bk: Key   conv params, PyTorch layout (Ck, Cin, 3, 3), (Ck,)
      wv, bv: Value conv params, PyTorch layout (Cv, Cin, 3, 3), (Cv,)
    Returns:
      (key, value) in NCHW: (B, Ck, H, W), (B, Cv, H, W)
    """
    B, Cin, H, W = x_nchw.shape
    Ck = wk.shape[0]
    Cv = wv.shape[0]
    N = Ck + Cv
    K = 9 * Cin
    Npad = ((N + 127) // 128) * 128          # lane-dense output width

    # ---- im2col in plain JAX (layout plumbing, not compute) ----------------
    x = jnp.transpose(x_nchw, (0, 2, 3, 1))                 # (B, H, W, Cin)
    xp = jnp.pad(x, ((0, 0), (1, 1), (1, 1), (0, 0)))       # SAME (pad=1)
    patches = jnp.concatenate(
        [xp[:, dy:dy + H, dx:dx + W, :] for dy in range(3) for dx in range(3)],
        axis=-1)                                            # (B, H, W, 9*Cin)
    M = B * H * W
    patches = patches.reshape(M, K).astype(jnp.bfloat16)

    # Row-block size: multiple of 8 sublanes; pad M up to a whole grid.
    blk_m = min(blk_m, max(8, ((M + 7) // 8) * 8))
    Mpad = pl.cdiv(M, blk_m) * blk_m
    if Mpad != M:
        patches = jnp.pad(patches, ((0, Mpad - M), (0, 0)))

    # ---- fused Key|Value weight, flattened to 2D, Cout padded to 128 -------
    # (Cout, Cin, kh, kw) -> (kh, kw, Cin, Cout); row order matches the patch
    # channel order (dy-major, then dx, then Cin).
    wk_t = jnp.transpose(wk, (2, 3, 1, 0))                  # (3, 3, Cin, Ck)
    wv_t = jnp.transpose(wv, (2, 3, 1, 0))                  # (3, 3, Cin, Cv)
    w2d = jnp.concatenate([wk_t, wv_t], axis=-1).reshape(K, N)
    w2d = jnp.pad(w2d, ((0, 0), (0, Npad - N))).astype(jnp.bfloat16)
    b2d = jnp.pad(jnp.concatenate([bk, bv]), (0, Npad - N))
    b2d = b2d.reshape(1, Npad).astype(jnp.float32)

    out = pl.pallas_call(
        _kv_matmul_kernel,
        out_shape=jax.ShapeDtypeStruct((Mpad, Npad), jnp.float32),
        grid=(Mpad // blk_m,),
        in_specs=[
            pl.BlockSpec((blk_m, K), lambda i: (i, 0)),     # patches row block
            pl.BlockSpec((K, Npad), lambda i: (0, 0)),      # fused weights (resident)
            pl.BlockSpec((1, Npad), lambda i: (0, 0)),      # fused bias (resident)
        ],
        out_specs=pl.BlockSpec((blk_m, Npad), lambda i: (i, 0)),
        compiler_params=pltpu.CompilerParams(
            dimension_semantics=("parallel",)),
    )(patches, w2d, b2d)

    # ---- split K/V and go back to NCHW --------------------------------------
    kv = out[:M].reshape(B, H, W, Npad)
    key = jnp.transpose(kv[..., :Ck], (0, 3, 1, 2)).astype(x_nchw.dtype)
    val = jnp.transpose(kv[..., Ck:N], (0, 3, 1, 2)).astype(x_nchw.dtype)
    return key, val


def _ref_conv_nchw(x, w, b):
    # Reference conv with the same numerics as the kernel: bf16 products,
    # f32 accumulation.
    out = jax.lax.conv_general_dilated(
        x.astype(jnp.bfloat16), w.astype(jnp.bfloat16),
        window_strides=(1, 1), padding=((1, 1), (1, 1)),
        dimension_numbers=("NCHW", "OIHW", "NCHW"),
        preferred_element_type=jnp.float32)
    return out + b[None, :, None, None]


if __name__ == "__main__":
    # Small shapes consistent with the module's forward.
    B, indim, H, W = 2, 4, 16, 16
    keydim, valdim = 8, 16

    key0 = jax.random.PRNGKey(0)
    k_x, k_wk, k_bk, k_wv, k_bv = jax.random.split(key0, 5)

    # Deterministic PyTorch-Conv2d-style init (uniform(-1/sqrt(fan_in), +)).
    fan_in = indim * 3 * 3
    bound = 1.0 / (fan_in ** 0.5)
    x = jax.random.normal(k_x, (B, indim, H, W), dtype=jnp.float32)
    wk = jax.random.uniform(k_wk, (keydim, indim, 3, 3), jnp.float32, -bound, bound)
    bk = jax.random.uniform(k_bk, (keydim,), jnp.float32, -bound, bound)
    wv = jax.random.uniform(k_wv, (valdim, indim, 3, 3), jnp.float32, -bound, bound)
    bv = jax.random.uniform(k_bv, (valdim,), jnp.float32, -bound, bound)

    fwd = jax.jit(key_value_forward)
    key_out, val_out = jax.block_until_ready(fwd(x, wk, bk, wv, bv))

    # Correctness check against the XLA conv reference (same bf16/f32 numerics).
    key_ref = _ref_conv_nchw(x, wk, bk)
    val_ref = _ref_conv_nchw(x, wv, bv)
    assert key_out.shape == (B, keydim, H, W)
    assert val_out.shape == (B, valdim, H, W)
    assert jnp.allclose(key_out, key_ref, atol=1e-3, rtol=1e-3)
    assert jnp.allclose(val_out, val_ref, atol=1e-3, rtol=1e-3)

    print("KERNEL_OK")
</pallas_src>

<mosaic_0001>
module attributes {stable_mosaic.version = 11 : i64} {
  func.func @_kv_matmul_kernel(%arg0: i32, %arg1: memref<256x36xbf16, #tpu.memory_space<vmem>>, %arg2: memref<36x128xbf16, #tpu.memory_space<vmem>>, %arg3: memref<1x128xf32, #tpu.memory_space<vmem>>, %arg4: memref<256x128xf32, #tpu.memory_space<vmem>>) attributes {dimension_semantics = [#tpu.dimension_semantics<parallel>], iteration_bounds = array<i64: 2>, scalar_prefetch = 0 : i64, scratch_operands = 0 : i64, tpu.core_type = #tpu.core_type<tc>, window_params = [{transform_indices = @transform_0, window_bounds = array<i64: 256, 36>}, {pipeline_mode = #tpu.pipeline_mode<synchronous>, transform_indices = @transform_1, window_bounds = array<i64: 36, 128>}, {pipeline_mode = #tpu.pipeline_mode<synchronous>, transform_indices = @transform_2, window_bounds = array<i64: 1, 128>}, {transform_indices = @transform_3, window_bounds = array<i64: 256, 128>}]} {
    %c0 = arith.constant 0 : index
    %c0_0 = arith.constant 0 : index
    %0 = vector.load %arg1[%c0, %c0_0] : memref<256x36xbf16, #tpu.memory_space<vmem>>, vector<256x36xbf16>
    %c0_1 = arith.constant 0 : index
    %c0_2 = arith.constant 0 : index
    %1 = vector.load %arg2[%c0_1, %c0_2] : memref<36x128xbf16, #tpu.memory_space<vmem>>, vector<36x128xbf16>
    %cst = arith.constant dense<0.000000e+00> : vector<256x128xf32>
    %2 = tpu.matmul %0, %1, %cst {dimension_numbers = #tpu.dot_dimension_numbers<[1], [0], [0], [1], [0, 0, 1, 1], [], []>} : vector<256x36xbf16>, vector<36x128xbf16>, vector<256x128xf32> -> vector<256x128xf32>
    %c0_3 = arith.constant 0 : index
    %c0_4 = arith.constant 0 : index
    %3 = vector.load %arg3[%c0_3, %c0_4] : memref<1x128xf32, #tpu.memory_space<vmem>>, vector<1x128xf32>
    %4 = vector.broadcast %3 : vector<1x128xf32> to vector<256x128xf32>
    %5 = arith.addf %2, %4 : vector<256x128xf32>
    %c0_5 = arith.constant 0 : index
    %c0_6 = arith.constant 0 : index
    %6 = vector.load %arg4[%c0_5, %c0_6] : memref<256x128xf32, #tpu.memory_space<vmem>>, vector<256x128xf32>
    tpu.vector_store %arg4[%c0_5, %c0_6], %5 {strides = array<i32>} : memref<256x128xf32, #tpu.memory_space<vmem>>, vector<256x128xf32>,
    return
  }
  func.func @transform_0(%arg0: i32) -> (i32, i32) {
    %c0_i32 = arith.constant 0 : i32
    %c0_i32_0 = arith.constant 0 : i32
    return %arg0, %c0_i32 : i32, i32
  }
  func.func @transform_1(%arg0: i32) -> (i32, i32) {
    %c0_i32 = arith.constant 0 : i32
    %c0_i32_0 = arith.constant 0 : i32
    %c0_i32_1 = arith.constant 0 : i32
    return %c0_i32, %c0_i32_0 : i32, i32
  }
  func.func @transform_2(%arg0: i32) -> (i32, i32) {
    %c0_i32 = arith.constant 0 : i32
    %c0_i32_0 = arith.constant 0 : i32
    %c0_i32_1 = arith.constant 0 : i32
    return %c0_i32, %c0_i32_0 : i32, i32
  }
  func.func @transform_3(%arg0: i32) -> (i32, i32) {
    %c0_i32 = arith.constant 0 : i32
    %c0_i32_0 = arith.constant 0 : i32
    return %arg0, %c0_i32 : i32, i32
  }
}

</mosaic_0001>

<bundles_post_ra>
// kernel: key_value_forward.1
= control target key start
LH: loop header
LB: loop body
LE: loop exit
PB: predicated region body
PF: predicated region fallthrough
CT: control target
= control target key end

     0   :  { %s704_s12 = smov 0   ;;  %s839_s0 = inlined_call_operand.vmem [shape: bf16[512,36], index: 0, kind: input, shape index: {}]   ;;  %s840_s1 = inlined_call_operand.vmem [shape: bf16[36,128], index: 1, kind: input, shape index: {}]   ;;  %s841_s2 = inlined_call_operand.vmem [shape: f32[1,128], index: 2, kind: input, shape index: {}]   ;;  %s842_s3 = inlined_call_operand.vmem [shape: f32[512,128], index: 3, kind: output, shape index: {}]  }
   0x1 LB: > { %s541_s13 = sadd.s32 4294967295, %s682_s12   ;;  %p545_p0 = scmp.ge.s32.totalorder %s682_s12, 1  ;;  %s682_s12 = sphi %s704_s12, %s13_s12  }
   0x2   : > { %p138_p1 = scmp.lt.s32.totalorder %s682_s12, 3 }
   0x4   : > { %p139_p2 = pnand %p545_p0, %p138_p1 }
   0x5   : > { %s546_s16 = sshll.u32 (!%p139_p2), %s541_s13, 5 }
   0x6   : > { %142 = sbr.rel (%p139_p2) target bundleno = 221 (0xdd), region = 32  ;;  %p163_p3 = scmp.lt.s32.totalorder (!%p139_p2), %s546_s16, 63 }
   0xb   : > { %v211_v0 = vld [vmem:[%s840_s1 + $0x10] sm:$0x3]  ;;  %vm360_vm0 = vcmask 1041408   ;;  %s844_s16 = smov (!%p163_p3, %s546_s16), 63  ;;  %v657_v4 = vld [vmem:[%s840_s1 + $0x8] sm:$0xff]  ;;  %v656_v5 = vld [vmem:[%s840_s1] sm:$0xff] }
   0xc   : > { %v305_v1 = vunpack.c.l.b16 %v211_v0  ;;  %s547_s19 = sshll.u32 %s844_s16, 2  ;;  %vm311_vm1 = vcmask 293888   ;;  %s549_s25 = sshll.u32 %s844_s16, 3  ;;  %v765_v22 = vld [vmem:[%s841_s2] ss:$0 sm:$0xff] }
   0xd   : > { %s727_s24 = scalar_lea.vmem %s839_s0, %s547_s19  ;;  %s770_s30 = scalar_lea.vmem %s842_s3, %s549_s25 }
   0xe   : > { %v308_v2 = vpack.c.b16 %v305_v1, %v305_v1  ;;  %v640_v6 = vld [vmem:[%s727_s24] sm:$0xff]  ;;  %v641_v10 = vld [vmem:[%s727_s24 + $0x8] sm:$0xff]  ;;  %v642_v14 = vld [vmem:[%s727_s24 + $0x10] sm:$0xff] }
   0xf   : > { %v644_v7 = vld [vmem:[%s727_s24 + $0x20] sm:$0xff]  ;;  %v645_v11 = vld [vmem:[%s727_s24 + $0x28] sm:$0xff]  ;;  %v646_v15 = vld [vmem:[%s727_s24 + $0x30] sm:$0xff] }
  0x10   : > { %v362_v3 = vsel %vm360_vm0, %v308_v2, 0  ;;  %v648_v8 = vld [vmem:[%s727_s24 + $0x40] sm:$0xff]  ;;  %v649_v12 = vld [vmem:[%s727_s24 + $0x48] sm:$0xff]  ;;  %v650_v16 = vld [vmem:[%s727_s24 + $0x50] sm:$0xff] }
  0x11   : > { %369 = vmatpush.bf16.msra.mxu0 %v362_v3  ;;  %658 = vmatpush.bf16.msra.mxu1 %v362_v3  ;;  %v652_v9 = vld [vmem:[%s727_s24 + $0x60] sm:$0xff]  ;;  %v653_v13 = vld [vmem:[%s727_s24 + $0x68] sm:$0xff]  ;;  %v654_v17 = vld [vmem:[%s727_s24 + $0x70] sm:$0xff] }
  0x12   : > { %659 = vmatpush.bf16.msra.mxu2 %v362_v3  ;;  %660 = vmatpush.bf16.msra.mxu3 %v362_v3  ;;  %v643_v18 = vld [vmem:[%s727_s24 + $0x18] sm:$0xff] }
  0x13   : > { %v647_v19 = vld [vmem:[%s727_s24 + $0x38] sm:$0xff] }
  0x14   : > { %v651_v20 = vld [vmem:[%s727_s24 + $0x58] sm:$0xff] }
  0x15   : > { %370 = vmatpush.bf16.msra.mxu0 %v657_v4  ;;  %661 = vmatpush.bf16.msra.mxu1 %v657_v4  ;;  %v655_v21 = vld [vmem:[%s727_s24 + $0x78] sm:$0xff] }
  0x16   : > { %662 = vmatpush.bf16.msra.mxu2 %v657_v4  ;;  %663 = vmatpush.bf16.msra.mxu3 %v657_v4 }
  0x19   : > { %371 = vmatpush.bf16.msra.mxu0 %v656_v5  ;;  %664 = vmatpush.bf16.msra.mxu1 %v656_v5 }
  0x1a   : > { %665 = vmatpush.bf16.msra.mxu2 %v656_v5  ;;  %666 = vmatpush.bf16.msra.mxu3 %v656_v5 }
  0x1c   : > { %622 = vmatmul.msk.bf16.vlgmr.msra.gmra.mxu0 %vm311_vm1, %v640_v6  ;;  %626 = vmatmul.msk.bf16.vlgmr.msra.gmra.mxu1 %vm311_vm1, %v644_v7 }
  0x1d   : > { %630 = vmatmul.msk.bf16.vlgmr.msra.gmra.mxu2 %vm311_vm1, %v648_v8  ;;  %634 = vmatmul.msk.bf16.vlgmr.msra.gmra.mxu3 %vm311_vm1, %v652_v9 }
  0x2c   : > { %623 = vmatmul.msk.bf16.gmra.mxu0 %vm311_vm1, %v641_v10  ;;  %627 = vmatmul.msk.bf16.gmra.mxu1 %vm311_vm1, %v645_v11 }
  0x2d   : > { %631 = vmatmul.msk.bf16.gmra.mxu2 %vm311_vm1, %v649_v12  ;;  %635 = vmatmul.msk.bf16.gmra.mxu3 %vm311_vm1, %v653_v13 }
  0x3c   : > { %624 = vmatmul.msk.bf16.gmra.mxu0 %vm311_vm1, %v642_v14  ;;  %628 = vmatmul.msk.bf16.gmra.mxu1 %vm311_vm1, %v646_v15 }
  0x3d   : > { %632 = vmatmul.msk.bf16.gmra.mxu2 %vm311_vm1, %v650_v16  ;;  %636 = vmatmul.msk.bf16.gmra.mxu3 %vm311_vm1, %v654_v17 }
  0x4c   : > { %625 = vmatmul.msk.bf16.gmra.mxu0 %vm311_vm1, %v643_v18  ;;  %629 = vmatmul.msk.bf16.gmra.mxu1 %vm311_vm1, %v647_v19 }
  0x4d   : > { %633 = vmatmul.msk.bf16.gmra.mxu2 %vm311_vm1, %v651_v20  ;;  %637 = vmatmul.msk.bf16.gmra.mxu3 %vm311_vm1, %v655_v21 }
  0x99   : > { %v373_v23 = vpop.f32.mrf.mxu0  ;;  %v393_v24 = vpop.f32.mrf.mxu1 }
  0x9a   : > { %v374_v25 = vadd.f32 %v765_v22, %v373_v23  ;;  %v394_v26 = vadd.f32 %v765_v22, %v393_v24 }
  0x9c   : > { %453 = vst [vmem:[%s770_s30] sm:$0xff] %v374_v25 }
  0x9d   : > { %461 = vst [vmem:[%s770_s30 + $0x40] sm:$0xff] %v394_v26 }
  0xa0   : > { %v413_v27 = vpop.f32.mrf.mxu2  ;;  %v433_v28 = vpop.f32.mrf.mxu3 }
  0xa1   : > { %v414_v29 = vadd.f32 %v765_v22, %v413_v27  ;;  %v434_v30 = vadd.f32 %v765_v22, %v433_v28  ;;  %v375_v31 = vpop.f32.mrf.mxu0  ;;  %v395_v32 = vpop.f32.mrf.mxu1 }
  0xa2   : > { %v376_v33 = vadd.f32 %v765_v22, %v375_v31  ;;  %v396_v34 = vadd.f32 %v765_v22, %v395_v32 }
  0xa3   : > { %469 = vst [vmem:[%s770_s30 + $0x80] sm:$0xff] %v414_v29 }
  0xa4   : > { %477 = vst [vmem:[%s770_s30 + $0xc0] sm:$0xff] %v434_v30 }
  0xa5   : > { %454 = vst [vmem:[%s770_s30 + $0x8] sm:$0xff] %v376_v33 }
  0xa6   : > { %462 = vst [vmem:[%s770_s30 + $0x48] sm:$0xff] %v396_v34 }
  0xa8   : > { %v415_v35 = vpop.f32.mrf.mxu2  ;;  %v435_v36 = vpop.f32.mrf.mxu3 }
  0xa9   : > { %v416_v37 = vadd.f32 %v765_v22, %v415_v35  ;;  %v436_v38 = vadd.f32 %v765_v22, %v435_v36  ;;  %v378_v39 = vpop.f32.mrf.mxu0  ;;  %v398_v40 = vpop.f32.mrf.mxu1 }
  0xaa   : > { %v379_v41 = vadd.f32 %v765_v22, %v378_v39  ;;  %v399_v42 = vadd.f32 %v765_v22, %v398_v40 }
  0xab   : > { %470 = vst [vmem:[%s770_s30 + $0x88] sm:$0xff] %v416_v37 }
  0xac   : > { %478 = vst [vmem:[%s770_s30 + $0xc8] sm:$0xff] %v436_v38 }
  0xad   : > { %455 = vst [vmem:[%s770_s30 + $0x10] sm:$0xff] %v379_v41 }
  0xae   : > { %463 = vst [vmem:[%s770_s30 + $0x50] sm:$0xff] %v399_v42 }
  0xb0   : > { %v418_v43 = vpop.f32.mrf.mxu2  ;;  %v438_v44 = vpop.f32.mrf.mxu3 }
  0xb1   : > { %v419_v45 = vadd.f32 %v765_v22, %v418_v43  ;;  %v439_v46 = vadd.f32 %v765_v22, %v438_v44  ;;  %v380_v47 = vpop.f32.mrf.mxu0  ;;  %v400_v48 = vpop.f32.mrf.mxu1 }
  0xb2   : > { %v381_v49 = vadd.f32 %v765_v22, %v380_v47  ;;  %v401_v50 = vadd.f32 %v765_v22, %v400_v48 }
  0xb3   : > { %471 = vst [vmem:[%s770_s30 + $0x90] sm:$0xff] %v419_v45 }
  0xb4   : > { %479 = vst [vmem:[%s770_s30 + $0xd0] sm:$0xff] %v439_v46 }
  0xb5   : > { %456 = vst [vmem:[%s770_s30 + $0x18] sm:$0xff] %v381_v49 }
  0xb6   : > { %464 = vst [vmem:[%s770_s30 + $0x58] sm:$0xff] %v401_v50 }
  0xb8   : > { %v420_v51 = vpop.f32.mrf.mxu2  ;;  %v440_v52 = vpop.f32.mrf.mxu3 }
  0xb9   : > { %v421_v53 = vadd.f32 %v765_v22, %v420_v51  ;;  %v441_v54 = vadd.f32 %v765_v22, %v440_v52  ;;  %v383_v55 = vpop.f32.mrf.mxu0  ;;  %v403_v56 = vpop.f32.mrf.mxu1 }
  0xba   : > { %v384_v57 = vadd.f32 %v765_v22, %v383_v55  ;;  %v404_v58 = vadd.f32 %v765_v22, %v403_v56 }
  0xbb   : > { %472 = vst [vmem:[%s770_s30 + $0x98] sm:$0xff] %v421_v53 }
  0xbc   : > { %480 = vst [vmem:[%s770_s30 + $0xd8] sm:$0xff] %v441_v54 }
  0xbd   : > { %457 = vst [vmem:[%s770_s30 + $0x20] sm:$0xff] %v384_v57 }
  0xbe   : > { %465 = vst [vmem:[%s770_s30 + $0x60] sm:$0xff] %v404_v58 }
  0xc0   : > { %v423_v59 = vpop.f32.mrf.mxu2  ;;  %v443_v60 = vpop.f32.mrf.mxu3 }
  0xc1   : > { %v424_v61 = vadd.f32 %v765_v22, %v423_v59  ;;  %v444_v62 = vadd.f32 %v765_v22, %v443_v60  ;;  %v385_v63 = vpop.f32.mrf.mxu0  ;;  %v405_v0 = vpop.f32.mrf.mxu1 }
  0xc2   : > { %v386_v1 = vadd.f32 %v765_v22, %v385_v63  ;;  %v406_v2 = vadd.f32 %v765_v22, %v405_v0 }
  0xc3   : > { %473 = vst [vmem:[%s770_s30 + $0xa0] sm:$0xff] %v424_v61 }
  0xc4   : > { %481 = vst [vmem:[%s770_s30 + $0xe0] sm:$0xff] %v444_v62 }
  0xc5   : > { %458 = vst [vmem:[%s770_s30 + $0x28] sm:$0xff] %v386_v1 }
  0xc6   : > { %466 = vst [vmem:[%s770_s30 + $0x68] sm:$0xff] %v406_v2 }
  0xc8   : > { %v425_v3 = vpop.f32.mrf.mxu2  ;;  %v445_v4 = vpop.f32.mrf.mxu3 }
  0xc9   : > { %v426_v5 = vadd.f32 %v765_v22, %v425_v3  ;;  %v446_v6 = vadd.f32 %v765_v22, %v445_v4  ;;  %v388_v7 = vpop.f32.mrf.mxu0  ;;  %v408_v8 = vpop.f32.mrf.mxu1 }
  0xca   : > { %v389_v9 = vadd.f32 %v765_v22, %v388_v7  ;;  %v409_v10 = vadd.f32 %v765_v22, %v408_v8 }
  0xcb   : > { %474 = vst [vmem:[%s770_s30 + $0xa8] sm:$0xff] %v426_v5 }
  0xcc   : > { %482 = vst [vmem:[%s770_s30 + $0xe8] sm:$0xff] %v446_v6 }
  0xcd   : > { %459 = vst [vmem:[%s770_s30 + $0x30] sm:$0xff] %v389_v9 }
  0xce   : > { %467 = vst [vmem:[%s770_s30 + $0x70] sm:$0xff] %v409_v10 }
  0xd0   : > { %v428_v11 = vpop.f32.mrf.mxu2  ;;  %v448_v12 = vpop.f32.mrf.mxu3 }
  0xd1   : > { %v429_v13 = vadd.f32 %v765_v22, %v428_v11  ;;  %v449_v14 = vadd.f32 %v765_v22, %v448_v12  ;;  %v390_v15 = vpop.f32.mrf.mxu0  ;;  %v410_v16 = vpop.f32.mrf.mxu1 }
  0xd2   : > { %v391_v17 = vadd.f32 %v765_v22, %v390_v15  ;;  %v411_v18 = vadd.f32 %v765_v22, %v410_v16 }
  0xd3   : > { %475 = vst [vmem:[%s770_s30 + $0xb0] sm:$0xff] %v429_v13 }
  0xd4   : > { %483 = vst [vmem:[%s770_s30 + $0xf0] sm:$0xff] %v449_v14 }
  0xd5   : > { %460 = vst [vmem:[%s770_s30 + $0x38] sm:$0xff] %v391_v17 }
  0xd6   : > { %468 = vst [vmem:[%s770_s30 + $0x78] sm:$0xff] %v411_v18 }
  0xd8   : > { %v430_v19 = vpop.f32.mrf.mxu2  ;;  %v450_v20 = vpop.f32.mrf.mxu3 }
  0xd9   : > { %v431_v21 = vadd.f32 %v765_v22, %v430_v19  ;;  %v451_v23 = vadd.f32 %v765_v22, %v450_v20 }
  0xdb   : > { %476 = vst [vmem:[%s770_s30 + $0xb8] sm:$0xff] %v431_v21 }
  0xdc   : > { %484 = vst [vmem:[%s770_s30 + $0xf8] sm:$0xff] %v451_v23 }
  0xdd PF: > { %s13_s12 = sadd.s32 1, %s682_s12  }
  0xde   : > { %p10_p4 = scmp.ge.s32.totalorder %s13_s12, 4  }
  0xe0   :  { %12 = sbr.rel (!%p10_p4) target bundleno = 1 (0x1), region = 62 }

</bundles_post_ra>
